<compile_context>
chip_gen: v7x
topology: tpu7x:2x2x1
jax: 0.10.0
libtpu: 0.0.40
codegen_flags: <defaults>
</compile_context>

<pallas_src>
import functools

import jax
import jax.numpy as jnp
from jax.experimental import pallas as pl
from jax.experimental.pallas import tpu as pltpu

LANES = 128
SUBLANES = 8
TM_MAX = 2048   # rows per tile: 2 inputs x 2 buffers x 1 MiB (f32) = 4 MiB of DMA buffers


def _num_tensorcores():
    """2 on megacore / 2-TC chips, 1 on single-TC chips (v5e / v6e)."""
    try:
        kind = jax.devices()[0].device_kind.lower()
    except Exception:
        return 1
    single_tc = ("v5e", "v5 lite", "v5lite", "v6e", "v6 lite", "v6lite")
    return 1 if any(m in kind for m in single_tc) else 2


def _focal_kernel(p_ref, y_ref, out_ref, acc_ref, *,
                  alpha, gamma, neg_scale, valid_rows, blocks_per_core,
                  tm, acc_rows):
    c = pl.program_id(0)   # core-split axis ("parallel"); serial / size-1 on 1-TC chips
    i = pl.program_id(1)   # reduction axis ("arbitrary")

    @pl.when(i == 0)
    def _():
        acc_ref[...] = jnp.zeros_like(acc_ref)

    p = p_ref[...].astype(jnp.float32)
    y = y_ref[...].astype(jnp.float32)

    is_pos = y == 1.0
    a = jnp.where(is_pos, alpha, 1.0 - alpha)
    pt = jnp.where(is_pos, p, 1.0 - p)
    # Binary labels: -(y*log(p) + (1-y)*log(1-p)) == -log(pt).
    # Accumulate +log(pt) terms; the minus sign lives in neg_scale (epilogue).
    log_pt = jnp.log(pt)
    one_m_pt = 1.0 - pt

    # Integer-gamma specialization: repeated VPU multiply instead of
    # jnp.power (which lowers to exp(gamma*log(x)) on the single EUP slot).
    if float(gamma).is_integer() and 0.0 <= float(gamma) <= 8.0:
        g = int(gamma)
        if g == 0:
            contrib = a * log_pt
        else:
            mod = one_m_pt
            for _ in range(g - 1):
                mod = mod * one_m_pt
            contrib = a * mod * log_pt
    else:
        contrib = a * jnp.power(one_m_pt, gamma) * log_pt

    def fold(x):
        # (tm, 128) -> (acc_rows, 128); layout-preserving reshape (groups of
        # whole (8,128) vregs) followed by a VPU sum over the major axis.
        return x.reshape(tm // acc_rows, acc_rows, LANES).sum(axis=0)

    block_idx = c * blocks_per_core + i
    # Only the last real (partially filled) block and clamped overhang blocks
    # of the core split need the row mask; interior blocks take the cheap path.
    needs_mask = (block_idx + 1) * tm > valid_rows

    @pl.when(jnp.logical_not(needs_mask))
    def _():
        acc_ref[...] += fold(contrib)

    @pl.when(needs_mask)
    def _():
        row0 = block_idx * tm
        local_row = jax.lax.broadcasted_iota(jnp.int32, (tm, LANES), 0)
        valid = (row0 + local_row) < valid_rows
        # jnp.where (not multiply-by-mask): padded/overhang lanes may be NaN.
        acc_ref[...] += fold(jnp.where(valid, contrib, 0.0))

    @pl.when(i == pl.num_programs(1) - 1)
    def _():
        acc = acc_ref[...]
        if acc_rows > SUBLANES:
            acc = acc.reshape(acc_rows // SUBLANES, SUBLANES, LANES).sum(axis=0)
        out_ref[...] = acc * neg_scale   # negation + mean/sum scaling in one mul


def focal_loss_v1(probs, label, alpha=0.25, gamma=2.0, reduction="mean"):
    """Pallas TPU implementation of FocalLossV1.forward (reduction 'mean'/'sum').

    `probs`/`label` may be any float/int dtype (bf16 recommended for large
    inputs: the kernel is HBM-bound and upcasts to f32 in VMEM).
    """
    assert probs.shape == label.shape
    if reduction not in ("mean", "sum"):
        # TODO(synk): reduction='none' (full elementwise output) not implemented.
        raise NotImplementedError("reduction must be 'mean' or 'sum'")

    n_elem = probs.size
    scale = (1.0 / float(n_elem)) if reduction == "mean" else 1.0

    p_flat = probs.reshape(-1)   # metadata-only reshape; keep native dtype
    y_flat = label.reshape(-1)

    rows = n_elem // LANES
    prefix = rows * LANES
    tail = n_elem - prefix

    total = jnp.zeros((), jnp.float32)

    if rows > 0:
        if tail:
            # Kernel runs only on the 128-aligned prefix; the <128-element
            # ragged tail is handled below with plain jnp ops (no full-array
            # concatenate / pad).
            p2 = p_flat[:prefix].reshape(rows, LANES)
            y2 = y_flat[:prefix].reshape(rows, LANES)
        else:
            p2 = p_flat.reshape(rows, LANES)   # zero-copy path (common case)
            y2 = y_flat.reshape(rows, LANES)

        tm = min(TM_MAX, pl.cdiv(rows, SUBLANES) * SUBLANES)
        acc_rows = 64 if tm % 64 == 0 else SUBLANES   # a few acc vregs for ILP
        row_blocks = pl.cdiv(rows, tm)
        num_cores = max(1, min(_num_tensorcores(), row_blocks))
        blocks_per_core = pl.cdiv(row_blocks, num_cores)

        def in_map(c, i):
            # Clamp so every DMA stays inside the array; overhang blocks are
            # zeroed by the in-kernel row mask.
            return (jnp.minimum(c * blocks_per_core + i, row_blocks - 1), 0)

        kernel = functools.partial(
            _focal_kernel,
            alpha=float(alpha),
            gamma=float(gamma),
            neg_scale=-scale,
            valid_rows=rows,
            blocks_per_core=blocks_per_core,
            tm=tm,
            acc_rows=acc_rows,
        )

        partials = pl.pallas_call(
            kernel,
            out_shape=jax.ShapeDtypeStruct((num_cores * SUBLANES, LANES), jnp.float32),
            grid_spec=pltpu.PrefetchScalarGridSpec(
                num_scalar_prefetch=0,
                grid=(num_cores, blocks_per_core),
                in_specs=[
                    pl.BlockSpec((tm, LANES), in_map),
                    pl.BlockSpec((tm, LANES), in_map),
                ],
                out_specs=pl.BlockSpec((SUBLANES, LANES), lambda c, i: (c, 0)),
                scratch_shapes=[pltpu.VMEM((acc_rows, LANES), jnp.float32)],
            ),
            compiler_params=pltpu.CompilerParams(
                # TODO(synk): on v7x verify via xprof that "parallel" actually
                # shards across the two TensorCores; otherwise switch to
                # pltpu.CORE_PARALLEL / pl.core_map.
                dimension_semantics=("parallel", "arbitrary"),
                vmem_limit_bytes=32 * 1024 * 1024,
            ),
        )(p2, y2)
        # Tiny final cross-lane reduce of the already scaled & negated partials.
        total = total + jnp.sum(partials)

    if tail:
        # Ragged tail (< 128 elements): negligible plain-jnp work.
        tp = p_flat[prefix:].astype(jnp.float32)
        ty = y_flat[prefix:].astype(jnp.float32)
        is_pos = ty == 1.0
        a = jnp.where(is_pos, float(alpha), 1.0 - float(alpha))
        pt = jnp.where(is_pos, tp, 1.0 - tp)
        tail_sum = jnp.sum(a * jnp.power(1.0 - pt, float(gamma)) * (-jnp.log(pt)))
        total = total + tail_sum * scale

    return total


def _focal_loss_ref(probs, label, alpha=0.25, gamma=2.0, reduction="mean"):
    # Faithful translation of the PyTorch module.
    p = probs.astype(jnp.float32)
    y = label.astype(jnp.float32)
    a = jnp.where(y == 1.0, alpha, 1.0 - alpha)
    ce = -(y * jnp.log(p)) - (1.0 - y) * jnp.log(1.0 - p)
    pt = jnp.where(y == 1.0, p, 1.0 - p)
    loss = a * jnp.power(1.0 - pt, gamma) * ce
    return jnp.mean(loss) if reduction == "mean" else jnp.sum(loss)


if __name__ == "__main__":
    key = jax.random.PRNGKey(0)
    k1, k2 = jax.random.split(key)

    # Small NCHW shapes: batch=2, channels=4, spatial=16x16.
    shape = (2, 4, 16, 16)
    # "logits" in this module are actually probabilities in (0, 1).
    probs = jax.random.uniform(k1, shape, jnp.float32, minval=1e-3, maxval=1.0 - 1e-3)
    label = jax.random.bernoulli(k2, 0.3, shape).astype(jnp.float32)

    out = jax.block_until_ready(focal_loss_v1(probs, label, 0.25, 2.0, "mean"))
    ref = _focal_loss_ref(probs, label, 0.25, 2.0, "mean")
    assert jnp.allclose(out, ref, rtol=1e-5, atol=1e-6), (out, ref)

    # Non-multiple-of-128 element count + 'sum' reduction exercises the
    # copy-free ragged-tail path and the pl.when-gated row mask.
    shape2 = (2, 3, 7, 5)
    p2 = jax.random.uniform(k1, shape2, jnp.float32, minval=1e-3, maxval=1.0 - 1e-3)
    y2 = jax.random.bernoulli(k2, 0.3, shape2).astype(jnp.float32)
    out2 = jax.block_until_ready(focal_loss_v1(p2, y2, reduction="sum"))
    ref2 = _focal_loss_ref(p2, y2, reduction="sum")
    assert jnp.allclose(out2, ref2, rtol=1e-5, atol=1e-5), (out2, ref2)

    print("KERNEL_OK")
</pallas_src>

<mosaic_0001>
module attributes {stable_mosaic.version = 11 : i64} {
  func.func @_focal_kernel(%arg0: i32, %arg1: i32, %arg2: memref<16x128xf32, #tpu.memory_space<vmem>>, %arg3: memref<16x128xf32, #tpu.memory_space<vmem>>, %arg4: memref<8x128xf32, #tpu.memory_space<vmem>>, %arg5: memref<8x128xf32, #tpu.memory_space<vmem>>) attributes {dimension_semantics = [#tpu.dimension_semantics<parallel>, #tpu.dimension_semantics<arbitrary>], iteration_bounds = array<i64: 1, 1>, scalar_prefetch = 0 : i64, scratch_operands = 1 : i64, tpu.core_type = #tpu.core_type<tc>, window_params = [{transform_indices = @transform_0, window_bounds = array<i64: 16, 128>}, {transform_indices = @transform_1, window_bounds = array<i64: 16, 128>}, {transform_indices = @transform_2, window_bounds = array<i64: 8, 128>}]} {
    %c0_i32 = arith.constant 0 : i32
    %0 = arith.cmpi eq, %arg1, %c0_i32 : i32
    %1 = arith.extui %0 : i1 to i32
    %c0_i32_0 = arith.constant 0 : i32
    %2 = arith.cmpi ne, %1, %c0_i32_0 : i32
    scf.if %2 {
      %cst_14 = arith.constant 0.000000e+00 : f32
      %32 = vector.broadcast %cst_14 : f32 to vector<8x128xf32>
      %c0_15 = arith.constant 0 : index
      %c0_16 = arith.constant 0 : index
      %33 = vector.load %arg5[%c0_15, %c0_16] : memref<8x128xf32, #tpu.memory_space<vmem>>, vector<8x128xf32>
      tpu.vector_store %arg5[%c0_15, %c0_16], %32 {strides = array<i32>} : memref<8x128xf32, #tpu.memory_space<vmem>>, vector<8x128xf32>,
    } else {
    }
    %c0 = arith.constant 0 : index
    %c0_1 = arith.constant 0 : index
    %3 = vector.load %arg2[%c0, %c0_1] : memref<16x128xf32, #tpu.memory_space<vmem>>, vector<16x128xf32>
    %c0_2 = arith.constant 0 : index
    %c0_3 = arith.constant 0 : index
    %4 = vector.load %arg3[%c0_2, %c0_3] : memref<16x128xf32, #tpu.memory_space<vmem>>, vector<16x128xf32>
    %cst = arith.constant 1.000000e+00 : f32
    %5 = vector.broadcast %cst : f32 to vector<16x128xf32>
    %6 = arith.cmpf oeq, %4, %5 : vector<16x128xf32>
    %cst_4 = arith.constant 2.500000e-01 : f32
    %cst_5 = arith.constant 7.500000e-01 : f32
    %7 = vector.broadcast %cst_4 : f32 to vector<16x128xf32>
    %8 = vector.broadcast %cst_5 : f32 to vector<16x128xf32>
    %9 = arith.select %6, %7, %8 : vector<16x128xi1>, vector<16x128xf32>
    %cst_6 = arith.constant 1.000000e+00 : f32
    %10 = vector.broadcast %cst_6 : f32 to vector<16x128xf32>
    %11 = arith.subf %10, %3 : vector<16x128xf32>
    %12 = arith.select %6, %3, %11 : vector<16x128xi1>, vector<16x128xf32>
    %13 = math.log %12 : vector<16x128xf32>
    %cst_7 = arith.constant 1.000000e+00 : f32
    %14 = vector.broadcast %cst_7 : f32 to vector<16x128xf32>
    %15 = arith.subf %14, %12 : vector<16x128xf32>
    %16 = arith.mulf %15, %15 : vector<16x128xf32>
    %17 = arith.mulf %9, %16 : vector<16x128xf32>
    %18 = arith.mulf %17, %13 : vector<16x128xf32>
    %c1_i32 = arith.constant 1 : i32
    %19 = arith.muli %arg0, %c1_i32 : i32
    %20 = arith.addi %19, %arg1 : i32
    %c1_i32_8 = arith.constant 1 : i32
    %21 = arith.addi %20, %c1_i32_8 : i32
    %c16_i32 = arith.constant 16 : i32
    %22 = arith.muli %21, %c16_i32 : i32
    %c16_i32_9 = arith.constant 16 : i32
    %23 = arith.cmpi sgt, %22, %c16_i32_9 : i32
    %true = arith.constant true
    %24 = arith.xori %23, %true : i1
    %25 = arith.extui %24 : i1 to i32
    %c0_i32_10 = arith.constant 0 : i32
    %26 = arith.cmpi ne, %25, %c0_i32_10 : i32
    scf.if %26 {
      %c0_14 = arith.constant 0 : index
      %c0_15 = arith.constant 0 : index
      %32 = vector.load %arg5[%c0_14, %c0_15] : memref<8x128xf32, #tpu.memory_space<vmem>>, vector<8x128xf32>
      %33 = vector.shape_cast %18 : vector<16x128xf32> to vector<2x8x128xf32>
      %cst_16 = arith.constant dense<0.000000e+00> : vector<8x128xf32>
      %34 = vector.multi_reduction <add>, %33, %cst_16 [0] : vector<2x8x128xf32> to vector<8x128xf32>
      %35 = arith.addf %32, %34 : vector<8x128xf32>
      %c0_17 = arith.constant 0 : index
      %c0_18 = arith.constant 0 : index
      %36 = vector.load %arg5[%c0_17, %c0_18] : memref<8x128xf32, #tpu.memory_space<vmem>>, vector<8x128xf32>
      tpu.vector_store %arg5[%c0_17, %c0_18], %35 {strides = array<i32>} : memref<8x128xf32, #tpu.memory_space<vmem>>, vector<8x128xf32>,
    } else {
    }
    %27 = arith.extui %23 : i1 to i32
    %c0_i32_11 = arith.constant 0 : i32
    %28 = arith.cmpi ne, %27, %c0_i32_11 : i32
    scf.if %28 {
      %c16_i32_14 = arith.constant 16 : i32
      %32 = arith.muli %20, %c16_i32_14 : i32
      %33 = tpu.iota {dimensions = array<i32: 0>} : vector<16x128xi32>
      %34 = vector.broadcast %32 : i32 to vector<16x128xi32>
      %35 = arith.addi %34, %33 : vector<16x128xi32>
      %c16_i32_15 = arith.constant 16 : i32
      %36 = vector.broadcast %c16_i32_15 : i32 to vector<16x128xi32>
      %37 = arith.cmpi slt, %35, %36 : vector<16x128xi32>
      %c0_16 = arith.constant 0 : index
      %c0_17 = arith.constant 0 : index
      %38 = vector.load %arg5[%c0_16, %c0_17] : memref<8x128xf32, #tpu.memory_space<vmem>>, vector<8x128xf32>
      %cst_18 = arith.constant 0.000000e+00 : f32
      %39 = vector.broadcast %cst_18 : f32 to vector<16x128xf32>
      %40 = arith.select %37, %18, %39 : vector<16x128xi1>, vector<16x128xf32>
      %41 = vector.shape_cast %40 : vector<16x128xf32> to vector<2x8x128xf32>
      %cst_19 = arith.constant dense<0.000000e+00> : vector<8x128xf32>
      %42 = vector.multi_reduction <add>, %41, %cst_19 [0] : vector<2x8x128xf32> to vector<8x128xf32>
      %43 = arith.addf %38, %42 : vector<8x128xf32>
      %c0_20 = arith.constant 0 : index
      %c0_21 = arith.constant 0 : index
      %44 = vector.load %arg5[%c0_20, %c0_21] : memref<8x128xf32, #tpu.memory_space<vmem>>, vector<8x128xf32>
      tpu.vector_store %arg5[%c0_20, %c0_21], %43 {strides = array<i32>} : memref<8x128xf32, #tpu.memory_space<vmem>>, vector<8x128xf32>,
    } else {
    }
    %c0_i32_12 = arith.constant 0 : i32
    %29 = arith.cmpi eq, %arg1, %c0_i32_12 : i32
    %30 = arith.extui %29 : i1 to i32
    %c0_i32_13 = arith.constant 0 : i32
    %31 = arith.cmpi ne, %30, %c0_i32_13 : i32
    scf.if %31 {
      %c0_14 = arith.constant 0 : index
      %c0_15 = arith.constant 0 : index
      %32 = vector.load %arg5[%c0_14, %c0_15] : memref<8x128xf32, #tpu.memory_space<vmem>>, vector<8x128xf32>
      %cst_16 = arith.constant -4.8828125E-4 : f32
      %33 = vector.broadcast %cst_16 : f32 to vector<8x128xf32>
      %34 = arith.mulf %32, %33 : vector<8x128xf32>
      %c0_17 = arith.constant 0 : index
      %c0_18 = arith.constant 0 : index
      %35 = vector.load %arg4[%c0_17, %c0_18] : memref<8x128xf32, #tpu.memory_space<vmem>>, vector<8x128xf32>
      tpu.vector_store %arg4[%c0_17, %c0_18], %34 {strides = array<i32>} : memref<8x128xf32, #tpu.memory_space<vmem>>, vector<8x128xf32>,
    } else {
    }
    return
  }
  func.func @transform_0(%arg0: i32, %arg1: i32) -> (i32, i32) {
    %c1_i32 = arith.constant 1 : i32
    %0 = arith.muli %arg0, %c1_i32 : i32
    %1 = arith.addi %0, %arg1 : i32
    %c0_i32 = arith.constant 0 : i32
    %2 = arith.minsi %1, %c0_i32 : i32
    %c0_i32_0 = arith.constant 0 : i32
    %c0_i32_1 = arith.constant 0 : i32
    return %2, %c0_i32_0 : i32, i32
  }
  func.func @transform_1(%arg0: i32, %arg1: i32) -> (i32, i32) {
    %c1_i32 = arith.constant 1 : i32
    %0 = arith.muli %arg0, %c1_i32 : i32
    %1 = arith.addi %0, %arg1 : i32
    %c0_i32 = arith.constant 0 : i32
    %2 = arith.minsi %1, %c0_i32 : i32
    %c0_i32_0 = arith.constant 0 : i32
    %c0_i32_1 = arith.constant 0 : i32
    return %2, %c0_i32_0 : i32, i32
  }
  func.func @transform_2(%arg0: i32, %arg1: i32) -> (i32, i32) {
    %c0_i32 = arith.constant 0 : i32
    %c0_i32_0 = arith.constant 0 : i32
    return %arg0, %c0_i32 : i32, i32
  }
}

</mosaic_0001>

<bundles_post_ra>
// kernel: tpu_custom_call.1
= control target key start
LH: loop header
LB: loop body
LE: loop exit
PB: predicated region body
PF: predicated region fallthrough
CT: control target
= control target key end

     0   :  { %7 = vsyncpa [#allocation4], 0  ;;  %s284_s0 = inlined_call_operand.hbm [shape: f32[16,128], index: 0, kind: input, shape index: {}]   ;;  %s285_s1 = inlined_call_operand.hbm [shape: f32[16,128], index: 1, kind: input, shape index: {}]   ;;  %s286_s2 = inlined_call_operand.hbm [shape: f32[8,128], index: 2, kind: output, shape index: {}]  }
   0x1   :  { %8 = vsyncpa [#allocation7], 0 }
   0x2   :  { %9 = vsyncpa [#allocation5], 0  ;;  %s227_s9 = smov [#allocation3]   ;;  %s155_s13 = scalar_lea.hbm %s284_s0, 256 }
   0x3   :  { %s21_s10 = sshll.u32 %s227_s9, 4  ;;  %p156_p0 = scmp.ne.s32.totalorder %s284_s0, %s155_s13  ;;  %s22_s10 = int_to_ptr.vmem [resolvable:$true] %s21_s10 }
   0x4   :  { %p159_p1 = scmp.lt.u32.totalorder %s155_s13, %s284_s0 }
   0x6   :  { %p161_p2 = pnand %p159_p1, %p156_p0 }
   0x8   :  { %164 = shalt.err (!%p161_p2)
}
   0x9   :  { %s165_s18 = scalar_lea.vmem %s22_s10, 256  ;;  %p170_p4 = scmp.lt.s32.totalorder %s22_s10, %s22_s10 }
   0xa   :  { %p166_p3 = scmp.ne.s32.totalorder %s22_s10, %s165_s18  ;;  %p171_p5 = scmp.lt.s32.totalorder %s165_s18, %s165_s18 }
   0xc   :  { %p172_p6 = por %p171_p5, %p170_p4 }
   0xe   :  { %p173_p7 = pnand %p172_p6, %p166_p3 }
  0x10   :  { %176 = shalt.err (!%p173_p7)
}
  0x11   :  { %s228_s19 = smov 128   ;;  %s229_s20 = smov 8  }
  0x12   :  { %27 = dma.hbm_to_vmem [thread:$0]  %s284_s0, 256, %s22_s10, [#allocation4], %s228_s19, %s228_s19, %s229_s20  }
  0x13   :  { %s230_s23 = smov [#allocation6]   ;;  %s177_s27 = scalar_lea.hbm %s285_s1, 256 }
  0x14   :  { %s39_s24 = sshll.u32 %s230_s23, 4  ;;  %p178_p8 = scmp.ne.s32.totalorder %s285_s1, %s177_s27  ;;  %s40_s24 = int_to_ptr.vmem [resolvable:$true] %s39_s24 }
  0x15   :  { %p181_p9 = scmp.lt.u32.totalorder %s177_s27, %s285_s1 }
  0x17   :  { %p183_p10 = pnand %p181_p9, %p178_p8 }
  0x19   :  { %186 = shalt.err (!%p183_p10)
}
  0x1a   :  { %s187_s4 = scalar_lea.vmem %s40_s24, 256  ;;  %p192_p12 = scmp.lt.s32.totalorder %s40_s24, %s40_s24 }
  0x1b   :  { %p188_p11 = scmp.ne.s32.totalorder %s40_s24, %s187_s4  ;;  %p193_p13 = scmp.lt.s32.totalorder %s187_s4, %s187_s4 }
  0x1d   :  { %p194_p0 = por %p193_p13, %p192_p12 }
  0x1f   :  { %p195_p1 = pnand %p194_p0, %p188_p11 }
  0x21   :  { %198 = shalt.err (!%p195_p1)
}
  0x22   :  { %45 = dma.hbm_to_vmem [thread:$0]  %s285_s1, 256, %s40_s24, [#allocation7], %s228_s19, %s228_s19, %s229_s20  }
  0x23   :  { %221 = dma.done.wait [#allocation4], 256  }
  0x24   :  { %222 = vsyncadd [#allocation4], 4294967040 }
  0x25   :  { %223 = dma.done.wait [#allocation7], 256  }
  0x26   :  { %224 = vsyncadd [#allocation7], 4294967040  ;;  %v65_v0 = vld [vmem:[#allocation3] sm:$0xff]  ;;  %v66_v1 = vld [vmem:[#allocation3 + $0x8] sm:$0xff]  ;;  %v231_v11 = vmov 0.75   ;;  %s232_s1 = smov [#allocation8]  }
  0x27   :  { %v67_v2 = vld [vmem:[#allocation6] sm:$0xff]  ;;  %v68_v3 = vld [vmem:[#allocation6 + $0x8] sm:$0xff]  ;;  %v73_v4 = vsub.f32 1.0, %v65_v0  ;;  %v74_v5 = vsub.f32 1.0, %v66_v1  ;;  %s131_s6 = sshll.u32 %s232_s1, 4  ;;  %s132_s6 = int_to_ptr.vmem [resolvable:$true] %s131_s6 }
  0x28   :  { %vm69_vm0 = vcmp.eq.f32.partialorder %v67_v2, 1.0  ;;  %vm70_vm1 = vcmp.eq.f32.partialorder %v68_v3, 1.0  ;;  %s199_s7 = scalar_lea.vmem %s132_s6, 128  ;;  %p204_p3 = scmp.lt.s32.totalorder %s132_s6, %s132_s6 }
  0x29   :  { %v75_v6 = vsel %vm69_vm0, %v65_v0, %v73_v4  ;;  %v76_v7 = vsel %vm70_vm1, %v66_v1, %v74_v5  ;;  %v71_v12 = vsel %vm69_vm0, 0.25, %v231_v11  ;;  %v72_v14 = vsel %vm70_vm1, 0.25, %v231_v11  ;;  %p200_p2 = scmp.ne.s32.totalorder %s132_s6, %s199_s7  ;;  %p205_p4 = scmp.lt.s32.totalorder %s199_s7, %s199_s7 }
  0x2a   :  { %151 = vlog2.f32 %v75_v6  ;;  %v81_v8 = vsub.f32 1.0, %v75_v6  ;;  %v82_v9 = vsub.f32 1.0, %v76_v7 }
  0x2b   :  { %153 = vlog2.f32 %v76_v7  ;;  %p206_p5 = por %p205_p4, %p204_p3 }
  0x2c   :  { %v83_v10 = vmul.f32 %v81_v8, %v81_v8  ;;  %v84_v13 = vmul.f32 %v82_v9, %v82_v9 }
  0x2d   :  { %p207_p6 = pnand %p206_p5, %p200_p2 }
  0x2e   :  { %v85_v15 = vmul.f32 %v83_v10, %v71_v12  ;;  %v86_v17 = vmul.f32 %v84_v13, %v72_v14 }
  0x34   :  { %v152_v16 = vpop.eup %151 }
  0x35   :  { %v154_v18 = vpop.eup %153  ;;  %v78_v19 = vmul.f32 0.6931472, %v152_v16 }
  0x36   :  { %v80_v20 = vmul.f32 0.6931472, %v154_v18 }
  0x37   :  { %v87_v21 = vmul.f32 %v85_v15, %v78_v19 }
  0x38   :  { %v88_v22 = vmul.f32 %v86_v17, %v80_v20 }
  0x3a   :  { %v98_v23 = vadd.f32 %v88_v22, %v87_v21 }
  0x3c   :  { %v123_v24 = vmul.f32 -0.00048828125, %v98_v23 }
  0x3e   :  { %124 = vst [vmem:[#allocation8] sm:$0xff] %v123_v24 }
  0x3f   :  { %210 = shalt.err (!%p207_p6)
}
  0x40   :  { %s211_s10 = scalar_lea.hbm %s286_s2, 128 }
  0x41   :  { %p212_p7 = scmp.ne.s32.totalorder %s286_s2, %s211_s10  ;;  %p215_p8 = scmp.lt.u32.totalorder %s211_s10, %s286_s2 }
  0x43   :  { %p217_p9 = pnand %p215_p8, %p212_p7 }
  0x45   :  { %220 = shalt.err (!%p217_p9)
}
  0x46   :  { %134 = dma.vmem_to_hbm [thread:$0]  %s132_s6, 128, %s286_s2, [#allocation5]  }
  0x47   :  { %225 = dma.done.wait [#allocation5], 128  }
  0x48   :  { %226 = vsyncadd [#allocation5], 4294967168 }
  0x49   :  { %138 = vsyncpa [#allocation4], 1 }
  0x4a   :  { %139 = vsyncpa [#allocation7], 1 }
  0x4b   :  { %140 = vsyncpa [#allocation5], 1 }

</bundles_post_ra>
